<compile_context>
chip_gen: v7x
topology: tpu7x:2x2x1
jax: 0.10.0
libtpu: 0.0.40
codegen_flags: <defaults>
</compile_context>

<pallas_src>
import functools

import jax
import jax.numpy as jnp
from jax.experimental import pallas as pl
from jax.experimental.pallas import tpu as pltpu

LANES = 128  # channel of a flat element f is f % 4 == lane % 4 (since 4 | 128)


@functools.lru_cache(maxsize=None)
def _tile_config():
    """Returns (max rows per block, vmem_limit_bytes), sized per TPU generation.

    Defaults are safe for v7x (64 MiB physical VMEM per TensorCore); chips
    reporting >= 100 MiB VMEM (v5e/v6e, 128 MiB) get a 2x larger streaming tile.
    """
    rows_max, vmem_limit = 8192, 48 * 1024 * 1024            # 4 MiB f32 / input tile
    try:
        info = pltpu.get_tpu_info()
        if getattr(info, "vmem_capacity_bytes", 0) >= 100 * 1024 * 1024:
            rows_max, vmem_limit = 16384, 80 * 1024 * 1024    # 8 MiB f32 / input tile
    except Exception:
        pass
    return rows_max, vmem_limit


def _row_align(dtype) -> int:
    """Sublane granularity for clean (8,128) / (16,128) tiles per dtype."""
    return 8 * max(1, 4 // jnp.dtype(dtype).itemsize)


def _sse_lane_kernel(p_ref, t_ref, acc_ref, *, rows_per_block, n_blocks,
                     rows_valid, needs_mask):
    """Accumulate lane-wise sum of squared differences into acc_ref (8, 128)."""
    i = pl.program_id(0)

    @pl.when(i == 0)
    def _():
        acc_ref[...] = jnp.zeros_like(acc_ref)

    r = p_ref.shape[0]
    d = p_ref[...].astype(jnp.float32) - t_ref[...].astype(jnp.float32)

    def accumulate(diff):
        sq = diff * diff
        # (R,128) -> (R//8, 8, 128): splits the sublane axis into whole vregs,
        # so the axis-0 reduction is pure VPU vreg adds (no XLU traffic).
        acc_ref[...] += jnp.sum(sq.reshape(r // 8, 8, LANES), axis=0)

    if not needs_mask:
        accumulate(d)
    else:
        # Only the final block overhangs the array; every bulk block stays
        # completely mask-free (no iota / compare / select on the hot path).
        @pl.when(i < n_blocks - 1)
        def _():
            accumulate(d)

        @pl.when(i == n_blocks - 1)
        def _():
            row0 = i * rows_per_block
            rows = jax.lax.broadcasted_iota(jnp.int32, (r, LANES), 0) + row0
            # Select (not multiply) so garbage NaN/Inf in the overhang region
            # cannot propagate into the accumulator.
            accumulate(jnp.where(rows < rows_valid, d, jnp.float32(0.0)))


def _lane_sse(pred_rows: jax.Array, targ_rows: jax.Array) -> jax.Array:
    """pred_rows, targ_rows: [n_rows, 128].  Returns [8, 128] f32 lane-wise SSE."""
    n_rows, lanes = pred_rows.shape
    assert lanes == LANES and targ_rows.shape == pred_rows.shape

    row_align = _row_align(pred_rows.dtype)
    assert n_rows >= row_align

    rows_max, vmem_limit = _tile_config()
    # Largest aligned block not exceeding n_rows: every block *starts* inside
    # the array, so only the final block can overhang (and only that block is
    # masked).  No jnp.minimum clamping, no duplicate DMA of a dead block.
    rows_per_block = min(rows_max, (n_rows // row_align) * row_align)
    n_blocks = -(-n_rows // rows_per_block)
    needs_mask = (n_rows % rows_per_block) != 0

    kernel = functools.partial(
        _sse_lane_kernel,
        rows_per_block=rows_per_block,
        n_blocks=n_blocks,
        rows_valid=n_rows,
        needs_mask=needs_mask,
    )

    in_bytes = int(pred_rows.size) * jnp.dtype(pred_rows.dtype).itemsize
    cost = pl.CostEstimate(
        flops=3 * n_rows * LANES,          # sub + mul + add per element
        transcendentals=0,
        bytes_accessed=2 * in_bytes + 8 * LANES * 4,
    )

    return pl.pallas_call(
        kernel,
        out_shape=jax.ShapeDtypeStruct((8, LANES), jnp.float32),
        grid_spec=pltpu.PrefetchScalarGridSpec(
            num_scalar_prefetch=0,
            grid=(n_blocks,),
            in_specs=[
                pl.BlockSpec((rows_per_block, LANES), lambda i: (i, 0)),
                pl.BlockSpec((rows_per_block, LANES), lambda i: (i, 0)),
            ],
            # Constant block index across the reduce axis -> resident accumulator.
            out_specs=pl.BlockSpec((8, LANES), lambda i: (0, 0)),
        ),
        compiler_params=pltpu.CompilerParams(
            dimension_semantics=("arbitrary",),
            vmem_limit_bytes=vmem_limit,
        ),
        cost_estimate=cost,
    )(pred_rows, targ_rows)


def circular_loss(predictions: jax.Array, targets: jax.Array):
    """predictions, targets: [B, N, 4].  Returns dict of scalar f32 losses."""
    B, N, C = predictions.shape
    assert C == 4 and targets.shape == predictions.shape
    M = B * N
    total = M * C

    # Free, contiguous flatten (bitcast) of the natural [B, N, 4] layout.
    flat_p = predictions.reshape(total)
    flat_t = targets.reshape(total)

    row_align = _row_align(predictions.dtype)
    min_elems = row_align * LANES
    if total % LANES != 0 or total < min_elems:
        # Tiny / lane-unaligned inputs: zero-pad to a multiple of row_align*128
        # so the (rows, 128) view exists; padded zeros contribute 0 to the SSE.
        # Lane-aligned inputs take the mask-the-tail path instead (no pad copy).
        # TODO(synk): for large lane-unaligned inputs, handle the <128-element
        # tail in glue instead of paying a full-array pad copy.
        padded = -(-total // min_elems) * min_elems
        flat_p = jnp.pad(flat_p, (0, padded - total))
        flat_t = jnp.pad(flat_t, (0, padded - total))

    n_rows = flat_p.shape[0] // LANES
    acc = _lane_sse(flat_p.reshape(n_rows, LANES),
                    flat_t.reshape(n_rows, LANES))              # [8, 128] f32

    # Fold sublanes, then lanes -> 4 channels (channel = lane % 4).
    sse_c = acc.sum(axis=0).reshape(LANES // 4, 4).sum(axis=0)  # [4]
    mse = sse_c / jnp.float32(M)

    swh_loss = mse[0]
    mwd_loss = mse[1] + mse[2]
    mwp_loss = mse[3]
    total_loss = swh_loss + mwd_loss + mwp_loss
    return {
        "total_loss": total_loss,
        "swh_loss": swh_loss,
        "mwd_loss": mwd_loss,
        "mwp_loss": mwp_loss,
    }


if __name__ == "__main__":
    base_key = jax.random.PRNGKey(0)

    def ref(p, t):
        mse = lambda a, b: jnp.mean((a - b) ** 2)
        swh = mse(p[:, :, 0], t[:, :, 0])
        mwd = mse(p[:, :, 1], t[:, :, 1]) + mse(p[:, :, 2], t[:, :, 2])
        mwp = mse(p[:, :, 3], t[:, :, 3])
        return {"total_loss": swh + mwd + mwp, "swh_loss": swh,
                "mwd_loss": mwd, "mwp_loss": mwp}

    loss_fn = jax.jit(circular_loss)

    # Case 1: tiny module-style shape (batch=2, nodes=8, 4 features) -> pad path.
    # Case 2: lane-aligned shape -> no-pad path with the masked tail block.
    for (B, N) in [(2, 8), (2, 528)]:
        kp, kt = jax.random.split(jax.random.fold_in(base_key, B * 10000 + N))
        predictions = jax.random.normal(kp, (B, N, 4), dtype=jnp.float32)
        targets = jax.random.normal(kt, (B, N, 4), dtype=jnp.float32)

        out = loss_fn(predictions, targets)
        out = jax.tree_util.tree_map(jax.block_until_ready, out)

        expect = ref(predictions, targets)
        for k in out:
            assert jnp.allclose(out[k], expect[k], rtol=1e-5, atol=1e-6), (
                k, out[k], expect[k])

    print("KERNEL_OK")
</pallas_src>

<mosaic_0001>
module attributes {stable_mosaic.version = 11 : i64} {
  func.func @_sse_lane_kernel(%arg0: i32, %arg1: memref<8x128xf32, #tpu.memory_space<vmem>>, %arg2: memref<8x128xf32, #tpu.memory_space<vmem>>, %arg3: memref<8x128xf32, #tpu.memory_space<vmem>>) attributes {dimension_semantics = [#tpu.dimension_semantics<arbitrary>], iteration_bounds = array<i64: 1>, scalar_prefetch = 0 : i64, scratch_operands = 0 : i64, tpu.core_type = #tpu.core_type<tc>, window_params = [{transform_indices = @transform_0, window_bounds = array<i64: 8, 128>}, {transform_indices = @transform_1, window_bounds = array<i64: 8, 128>}, {pipeline_mode = #tpu.pipeline_mode<synchronous>, transform_indices = @transform_2, window_bounds = array<i64: 8, 128>}]} {
    %c0_i32 = arith.constant 0 : i32
    %0 = arith.cmpi eq, %arg0, %c0_i32 : i32
    %1 = arith.extui %0 : i1 to i32
    %c0_i32_0 = arith.constant 0 : i32
    %2 = arith.cmpi ne, %1, %c0_i32_0 : i32
    scf.if %2 {
      %cst_8 = arith.constant 0.000000e+00 : f32
      %12 = vector.broadcast %cst_8 : f32 to vector<8x128xf32>
      %c0_9 = arith.constant 0 : index
      %c0_10 = arith.constant 0 : index
      %13 = vector.load %arg3[%c0_9, %c0_10] : memref<8x128xf32, #tpu.memory_space<vmem>>, vector<8x128xf32>
      tpu.vector_store %arg3[%c0_9, %c0_10], %12 {strides = array<i32>} : memref<8x128xf32, #tpu.memory_space<vmem>>, vector<8x128xf32>,
    } else {
    }
    %c0 = arith.constant 0 : index
    %c0_1 = arith.constant 0 : index
    %3 = vector.load %arg1[%c0, %c0_1] : memref<8x128xf32, #tpu.memory_space<vmem>>, vector<8x128xf32>
    %c0_2 = arith.constant 0 : index
    %c0_3 = arith.constant 0 : index
    %4 = vector.load %arg2[%c0_2, %c0_3] : memref<8x128xf32, #tpu.memory_space<vmem>>, vector<8x128xf32>
    %5 = arith.subf %3, %4 : vector<8x128xf32>
    %6 = arith.mulf %5, %5 : vector<8x128xf32>
    %c0_4 = arith.constant 0 : index
    %c0_5 = arith.constant 0 : index
    %7 = vector.load %arg3[%c0_4, %c0_5] : memref<8x128xf32, #tpu.memory_space<vmem>>, vector<8x128xf32>
    %8 = vector.shape_cast %6 : vector<8x128xf32> to vector<1x8x128xf32>
    %cst = arith.constant dense<0.000000e+00> : vector<8x128xf32>
    %9 = vector.multi_reduction <add>, %8, %cst [0] : vector<1x8x128xf32> to vector<8x128xf32>
    %10 = arith.addf %7, %9 : vector<8x128xf32>
    %c0_6 = arith.constant 0 : index
    %c0_7 = arith.constant 0 : index
    %11 = vector.load %arg3[%c0_6, %c0_7] : memref<8x128xf32, #tpu.memory_space<vmem>>, vector<8x128xf32>
    tpu.vector_store %arg3[%c0_6, %c0_7], %10 {strides = array<i32>} : memref<8x128xf32, #tpu.memory_space<vmem>>, vector<8x128xf32>,
    return
  }
  func.func @transform_0(%arg0: i32) -> (i32, i32) {
    %c0_i32 = arith.constant 0 : i32
    %c0_i32_0 = arith.constant 0 : i32
    return %arg0, %c0_i32 : i32, i32
  }
  func.func @transform_1(%arg0: i32) -> (i32, i32) {
    %c0_i32 = arith.constant 0 : i32
    %c0_i32_0 = arith.constant 0 : i32
    return %arg0, %c0_i32 : i32, i32
  }
  func.func @transform_2(%arg0: i32) -> (i32, i32) {
    %c0_i32 = arith.constant 0 : i32
    %c0_i32_0 = arith.constant 0 : i32
    %c0_i32_1 = arith.constant 0 : i32
    return %c0_i32, %c0_i32_0 : i32, i32
  }
}

</mosaic_0001>

<bundles_post_ra>
// kernel: circular_loss.1
= control target key start
LH: loop header
LB: loop body
LE: loop exit
PB: predicated region body
PF: predicated region fallthrough
CT: control target
= control target key end

     0   :  { %s53_s0 = inlined_call_operand.vmem [shape: f32[8,128], index: 0, kind: input, shape index: {}]   ;;  %s54_s1 = inlined_call_operand.vmem [shape: f32[8,128], index: 1, kind: input, shape index: {}]   ;;  %s55_s2 = inlined_call_operand.vmem [shape: f32[8,128], index: 2, kind: output, shape index: {}]  }
   0x1   :  { %v16_v0 = vld [vmem:[%s53_s0] sm:$0xff] }
   0x2   :  { %v17_v1 = vld [vmem:[%s54_s1] sm:$0xff] }
   0x3   :  { %v18_v2 = vsub.f32 %v16_v0, %v17_v1 }
   0x5   :  { %v19_v3 = vmul.f32 %v18_v2, %v18_v2 }
   0x7   :  { %23 = vst [vmem:[%s55_s2] sm:$0xff] %v19_v3 }

</bundles_post_ra>
